<compile_context>
chip_gen: v7x
topology: tpu7x:2x2x1
jax: 0.10.0
libtpu: 0.0.40
codegen_flags: <defaults>
</compile_context>

<pallas_src>
import jax
import jax.numpy as jnp
from jax.experimental import pallas as pl
from jax.experimental.pallas import tpu as pltpu

BN_EPS = 1e-5


def _batchnorm(h, gamma, beta):
    # Training-mode BatchNorm1d, folded into a per-feature scale/shift:
    #   scale = gamma * rsqrt(var + eps);   y = (h - mean) * scale + beta
    # The per-element cost is one mul + one add (the sub is shared with the
    # variance computation).
    mean = jnp.mean(h, axis=0, keepdims=True)
    c = h - mean
    var = jnp.mean(c * c, axis=0, keepdims=True)
    scale = gamma * jax.lax.rsqrt(var + BN_EPS)
    return c * scale + beta


def residual_block_kernel(x_ref, wcat_ref, w2_ref, vec_ref, o_ref):
    out_dim = o_ref.shape[1]
    mm_dtype = wcat_ref.dtype  # matmul operand dtype (f32 or bf16)

    x = x_ref[...].astype(mm_dtype)

    # Packed per-feature vectors: rows 0..4 = g1, be1, g2, be2, bs (rows 5..7 pad).
    vecs = vec_ref[...]
    g1, be1 = vecs[0:1], vecs[1:2]
    g2, be2 = vecs[2:3], vecs[3:4]
    bs = vecs[4:5]

    # One MXU pass over x computes both fc1 and the skip projection.
    xw = jnp.dot(x, wcat_ref[...], preferred_element_type=jnp.float32)
    h = xw[:, :out_dim]
    identity = xw[:, out_dim:] + bs  # skip bias is NOT followed by BN -> keep it

    # bn1 (training mode; fc1 bias is cancelled by the mean subtraction) + relu
    h = _batchnorm(h, g1, be1)
    h = jnp.maximum(h, 0.0)

    # fc2 -> bn2 (fc2 bias likewise cancelled)
    h = jnp.dot(h.astype(mm_dtype), w2_ref[...], preferred_element_type=jnp.float32)
    h = _batchnorm(h, g2, be2)

    # residual add + final relu
    o_ref[...] = jnp.maximum(h + identity, 0.0).astype(o_ref.dtype)


def residual_block(x, params, *, matmul_dtype=jnp.float32):
    """x: (B, in_dim) float32.  params: dict in the layout of make_params().

    matmul_dtype=jnp.bfloat16 selects the native MXU operand path for
    v6e/v7x; BN / ReLU / accumulation stay float32 either way.
    """
    B, in_dim = x.shape
    out_dim = params["w1"].shape[1]

    # Parameter prep (in a real model this is done once at weight-load time):
    # fuse fc1 + skip weights along N; pack per-feature vectors into one tile.
    w_cat = jnp.concatenate([params["w1"], params["ws"]], axis=1).astype(matmul_dtype)
    w2 = params["w2"].astype(matmul_dtype)
    vecs = jnp.concatenate(
        [params["g1"], params["be1"], params["g2"], params["be2"], params["bs"],
         jnp.zeros((3, out_dim), jnp.float32)],
        axis=0,
    )  # (8, out_dim)

    itemsize = jnp.dtype(matmul_dtype).itemsize
    bytes_accessed = (
        x.size * 4
        + (w_cat.size + w2.size) * itemsize
        + vecs.size * 4
        + B * out_dim * 4
    )
    cost = pl.CostEstimate(
        flops=2 * B * (in_dim * 2 * out_dim + out_dim * out_dim),
        transcendentals=2 * out_dim,  # two per-feature rsqrt rows
        bytes_accessed=bytes_accessed,
    )

    vmem = pl.BlockSpec(memory_space=pltpu.MemorySpace.VMEM)
    return pl.pallas_call(
        residual_block_kernel,
        out_shape=jax.ShapeDtypeStruct((B, out_dim), jnp.float32),
        in_specs=[vmem, vmem, vmem, vmem],
        out_specs=vmem,
        cost_estimate=cost,
    )(x, w_cat, w2, vecs)


def make_params(key, in_dim, out_dim):
    ks = jax.random.split(key, 6)
    scale1 = 1.0 / jnp.sqrt(in_dim)
    scale2 = 1.0 / jnp.sqrt(out_dim)
    return {
        # fc1: (in_dim, out_dim) so that y = x @ W + b
        "w1": jax.random.uniform(ks[0], (in_dim, out_dim), jnp.float32, -scale1, scale1),
        "b1": jax.random.uniform(ks[1], (1, out_dim), jnp.float32, -scale1, scale1),
        # bn1 affine (perturbed from PyTorch defaults so scale/shift is exercised)
        "g1": jnp.ones((1, out_dim), jnp.float32) * 1.1,
        "be1": jnp.full((1, out_dim), 0.05, jnp.float32),
        # fc2: (out_dim, out_dim)
        "w2": jax.random.uniform(ks[2], (out_dim, out_dim), jnp.float32, -scale2, scale2),
        "b2": jax.random.uniform(ks[3], (1, out_dim), jnp.float32, -scale2, scale2),
        "g2": jnp.ones((1, out_dim), jnp.float32) * 0.9,
        "be2": jnp.full((1, out_dim), -0.02, jnp.float32),
        # skip linear (in_dim != out_dim): (in_dim, out_dim)
        "ws": jax.random.uniform(ks[4], (in_dim, out_dim), jnp.float32, -scale1, scale1),
        "bs": jax.random.uniform(ks[5], (1, out_dim), jnp.float32, -scale1, scale1),
    }


def residual_block_ref(x, p):
    """Pure-JAX reference mirroring the PyTorch forward (training mode).

    Keeps the fc1/fc2 biases so the test also verifies that dropping them in
    the kernel (they are cancelled by BN's mean subtraction) is exact.
    """
    def bn(h, g, b):
        m = jnp.mean(h, axis=0, keepdims=True)
        v = jnp.mean((h - m) ** 2, axis=0, keepdims=True)
        return (h - m) / jnp.sqrt(v + BN_EPS) * g + b

    h = x @ p["w1"] + p["b1"]
    h = jnp.maximum(bn(h, p["g1"], p["be1"]), 0.0)
    h = h @ p["w2"] + p["b2"]
    h = bn(h, p["g2"], p["be2"])
    identity = x @ p["ws"] + p["bs"]
    return jnp.maximum(h + identity, 0.0)


if __name__ == "__main__":
    B, IN_DIM, OUT_DIM = 8, 32, 64

    key = jax.random.PRNGKey(0)
    kx, kp = jax.random.split(key)
    x = jax.random.normal(kx, (B, IN_DIM), jnp.float32)
    params = make_params(kp, IN_DIM, OUT_DIM)

    ref = residual_block_ref(x, params)

    # f32 matmul path — must match the PyTorch-style reference tightly.
    out = jax.block_until_ready(residual_block(x, params))
    assert out.shape == (B, OUT_DIM)
    assert jnp.allclose(out, ref, atol=1e-4, rtol=1e-4), "f32 path mismatch vs reference"

    # bf16 matmul-operand path (v6e/v7x MXU native); BN/ReLU remain f32.
    out_bf16 = jax.block_until_ready(
        residual_block(x, params, matmul_dtype=jnp.bfloat16)
    )
    assert out_bf16.shape == (B, OUT_DIM)
    assert jnp.allclose(out_bf16, ref, atol=5e-2, rtol=5e-2), "bf16 path mismatch vs reference"

    print("KERNEL_OK")
</pallas_src>

<mosaic_0001>
module attributes {stable_mosaic.version = 11 : i64} {
  func.func @residual_block_kernel(%arg0: memref<8x32xf32, #tpu.memory_space<vmem>>, %arg1: memref<32x128xf32, #tpu.memory_space<vmem>>, %arg2: memref<64x64xf32, #tpu.memory_space<vmem>>, %arg3: memref<8x64xf32, #tpu.memory_space<vmem>>, %arg4: memref<8x64xf32, #tpu.memory_space<vmem>>) attributes {dimension_semantics = [], scalar_prefetch = 0 : i64, scratch_operands = 0 : i64, tpu.core_type = #tpu.core_type<tc>} {
    %c0 = arith.constant 0 : index
    %c0_0 = arith.constant 0 : index
    %0 = vector.load %arg0[%c0, %c0_0] : memref<8x32xf32, #tpu.memory_space<vmem>>, vector<8x32xf32>
    %c0_1 = arith.constant 0 : index
    %c0_2 = arith.constant 0 : index
    %1 = vector.load %arg3[%c0_1, %c0_2] : memref<8x64xf32, #tpu.memory_space<vmem>>, vector<8x64xf32>
    %2 = vector.extract_strided_slice %1 {offsets = [0, 0], sizes = [1, 64], strides = [1, 1]} : vector<8x64xf32> to vector<1x64xf32>
    %3 = vector.extract_strided_slice %1 {offsets = [1, 0], sizes = [1, 64], strides = [1, 1]} : vector<8x64xf32> to vector<1x64xf32>
    %4 = vector.extract_strided_slice %1 {offsets = [2, 0], sizes = [1, 64], strides = [1, 1]} : vector<8x64xf32> to vector<1x64xf32>
    %5 = vector.extract_strided_slice %1 {offsets = [3, 0], sizes = [1, 64], strides = [1, 1]} : vector<8x64xf32> to vector<1x64xf32>
    %6 = vector.extract_strided_slice %1 {offsets = [4, 0], sizes = [1, 64], strides = [1, 1]} : vector<8x64xf32> to vector<1x64xf32>
    %c0_3 = arith.constant 0 : index
    %c0_4 = arith.constant 0 : index
    %7 = vector.load %arg1[%c0_3, %c0_4] : memref<32x128xf32, #tpu.memory_space<vmem>>, vector<32x128xf32>
    %cst = arith.constant dense<0.000000e+00> : vector<8x128xf32>
    %8 = tpu.matmul %0, %7, %cst {dimension_numbers = #tpu.dot_dimension_numbers<[1], [0], [0], [1], [0, 0, 1, 1], [], []>} : vector<8x32xf32>, vector<32x128xf32>, vector<8x128xf32> -> vector<8x128xf32>
    %9 = vector.extract_strided_slice %8 {offsets = [0, 0], sizes = [8, 64], strides = [1, 1]} : vector<8x128xf32> to vector<8x64xf32>
    %10 = vector.extract_strided_slice %8 {offsets = [0, 64], sizes = [8, 64], strides = [1, 1]} : vector<8x128xf32> to vector<8x64xf32>
    %11 = vector.broadcast %6 : vector<1x64xf32> to vector<8x64xf32>
    %12 = arith.addf %10, %11 : vector<8x64xf32>
    %cst_5 = arith.constant dense<0.000000e+00> : vector<64xf32>
    %13 = vector.multi_reduction <add>, %9, %cst_5 [0] : vector<8x64xf32> to vector<64xf32>
    %14 = vector.shape_cast %13 : vector<64xf32> to vector<1x64xf32>
    %cst_6 = arith.constant 8.000000e+00 : f32
    %15 = vector.broadcast %cst_6 : f32 to vector<1x64xf32>
    %16 = arith.divf %14, %15 : vector<1x64xf32>
    %17 = vector.broadcast %16 : vector<1x64xf32> to vector<8x64xf32>
    %18 = arith.subf %9, %17 : vector<8x64xf32>
    %19 = arith.mulf %18, %18 : vector<8x64xf32>
    %cst_7 = arith.constant dense<0.000000e+00> : vector<64xf32>
    %20 = vector.multi_reduction <add>, %19, %cst_7 [0] : vector<8x64xf32> to vector<64xf32>
    %21 = vector.shape_cast %20 : vector<64xf32> to vector<1x64xf32>
    %cst_8 = arith.constant 8.000000e+00 : f32
    %22 = vector.broadcast %cst_8 : f32 to vector<1x64xf32>
    %23 = arith.divf %21, %22 : vector<1x64xf32>
    %cst_9 = arith.constant 9.99999974E-6 : f32
    %24 = vector.broadcast %cst_9 : f32 to vector<1x64xf32>
    %25 = arith.addf %23, %24 : vector<1x64xf32>
    %26 = math.rsqrt %25 : vector<1x64xf32>
    %27 = arith.mulf %2, %26 : vector<1x64xf32>
    %28 = vector.broadcast %27 : vector<1x64xf32> to vector<8x64xf32>
    %29 = arith.mulf %18, %28 : vector<8x64xf32>
    %30 = vector.broadcast %3 : vector<1x64xf32> to vector<8x64xf32>
    %31 = arith.addf %29, %30 : vector<8x64xf32>
    %cst_10 = arith.constant 0.000000e+00 : f32
    %32 = vector.broadcast %cst_10 : f32 to vector<8x64xf32>
    %33 = arith.maximumf %31, %32 : vector<8x64xf32>
    %c0_11 = arith.constant 0 : index
    %c0_12 = arith.constant 0 : index
    %34 = vector.load %arg2[%c0_11, %c0_12] : memref<64x64xf32, #tpu.memory_space<vmem>>, vector<64x64xf32>
    %cst_13 = arith.constant dense<0.000000e+00> : vector<8x64xf32>
    %35 = tpu.matmul %33, %34, %cst_13 {dimension_numbers = #tpu.dot_dimension_numbers<[1], [0], [0], [1], [0, 0, 1, 1], [], []>} : vector<8x64xf32>, vector<64x64xf32>, vector<8x64xf32> -> vector<8x64xf32>
    %cst_14 = arith.constant dense<0.000000e+00> : vector<64xf32>
    %36 = vector.multi_reduction <add>, %35, %cst_14 [0] : vector<8x64xf32> to vector<64xf32>
    %37 = vector.shape_cast %36 : vector<64xf32> to vector<1x64xf32>
    %cst_15 = arith.constant 8.000000e+00 : f32
    %38 = vector.broadcast %cst_15 : f32 to vector<1x64xf32>
    %39 = arith.divf %37, %38 : vector<1x64xf32>
    %40 = vector.broadcast %39 : vector<1x64xf32> to vector<8x64xf32>
    %41 = arith.subf %35, %40 : vector<8x64xf32>
    %42 = arith.mulf %41, %41 : vector<8x64xf32>
    %cst_16 = arith.constant dense<0.000000e+00> : vector<64xf32>
    %43 = vector.multi_reduction <add>, %42, %cst_16 [0] : vector<8x64xf32> to vector<64xf32>
    %44 = vector.shape_cast %43 : vector<64xf32> to vector<1x64xf32>
    %cst_17 = arith.constant 8.000000e+00 : f32
    %45 = vector.broadcast %cst_17 : f32 to vector<1x64xf32>
    %46 = arith.divf %44, %45 : vector<1x64xf32>
    %cst_18 = arith.constant 9.99999974E-6 : f32
    %47 = vector.broadcast %cst_18 : f32 to vector<1x64xf32>
    %48 = arith.addf %46, %47 : vector<1x64xf32>
    %49 = math.rsqrt %48 : vector<1x64xf32>
    %50 = arith.mulf %4, %49 : vector<1x64xf32>
    %51 = vector.broadcast %50 : vector<1x64xf32> to vector<8x64xf32>
    %52 = arith.mulf %41, %51 : vector<8x64xf32>
    %53 = vector.broadcast %5 : vector<1x64xf32> to vector<8x64xf32>
    %54 = arith.addf %52, %53 : vector<8x64xf32>
    %55 = arith.addf %54, %12 : vector<8x64xf32>
    %cst_19 = arith.constant 0.000000e+00 : f32
    %56 = vector.broadcast %cst_19 : f32 to vector<8x64xf32>
    %57 = arith.maximumf %55, %56 : vector<8x64xf32>
    %c0_20 = arith.constant 0 : index
    %c0_21 = arith.constant 0 : index
    %58 = vector.load %arg4[%c0_20, %c0_21] : memref<8x64xf32, #tpu.memory_space<vmem>>, vector<8x64xf32>
    tpu.vector_store %arg4[%c0_20, %c0_21], %57 {strides = array<i32>} : memref<8x64xf32, #tpu.memory_space<vmem>>, vector<8x64xf32>,
    return
  }
}

</mosaic_0001>

<bundles_post_ra>
// kernel: tpu_custom_call.1
= control target key start
LH: loop header
LB: loop body
LE: loop exit
PB: predicated region body
PF: predicated region fallthrough
CT: control target
= control target key end

     0   :  { %9 = vsyncpa [#allocation3], 0  ;;  %s601_s0 = inlined_call_operand.hbm [shape: f32[8,32], index: 0, kind: input, shape index: {}]   ;;  %s602_s1 = inlined_call_operand.hbm [shape: f32[32,128], index: 1, kind: input, shape index: {}]   ;;  %s603_s2 = inlined_call_operand.hbm [shape: f32[64,64], index: 2, kind: input, shape index: {}]   ;;  %s604_s3 = inlined_call_operand.vmem [shape: f32[8,64], index: 3, kind: input, shape index: {}]   ;;  %s605_s4 = inlined_call_operand.hbm [shape: f32[8,64], index: 4, kind: output, shape index: {}]  }
   0x1   :  { %10 = vsyncpa [#allocation6], 0 }
   0x2   :  { %11 = vsyncpa [#allocation4], 0  ;;  %s487_s15 = smov [#allocation5]   ;;  %s393_s19 = scalar_lea.hbm %s602_s1, 512 }
   0x3   :  { %s27_s16 = sshll.u32 %s487_s15, 4  ;;  %p394_p0 = scmp.ne.s32.totalorder %s602_s1, %s393_s19  ;;  %s28_s16 = int_to_ptr.vmem [resolvable:$true] %s27_s16 }
   0x4   :  { %p397_p1 = scmp.lt.u32.totalorder %s393_s19, %s602_s1 }
   0x6   :  { %p399_p2 = pnand %p397_p1, %p394_p0 }
   0x8   :  { %402 = shalt.err (!%p399_p2)
}
   0x9   :  { %s403_s24 = scalar_lea.vmem %s28_s16, 512  ;;  %p408_p4 = scmp.lt.s32.totalorder %s28_s16, %s28_s16 }
   0xa   :  { %p404_p3 = scmp.ne.s32.totalorder %s28_s16, %s403_s24  ;;  %p409_p5 = scmp.lt.s32.totalorder %s403_s24, %s403_s24 }
   0xc   :  { %p410_p6 = por %p409_p5, %p408_p4 }
   0xe   :  { %p411_p7 = pnand %p410_p6, %p404_p3 }
  0x10   :  { %414 = shalt.err (!%p411_p7)
}
  0x11   :  { %s488_s25 = smov 128   ;;  %s489_s26 = smov 8  }
  0x12   :  { %33 = dma.hbm_to_vmem [thread:$0]  %s602_s1, 512, %s28_s16, [#allocation6], %s488_s25, %s488_s25, %s489_s26  }
  0x13   :  { %s490_s29 = smov [#allocation2]   ;;  %s491_s5 = smov [#allocation7]  }
  0x14   :  { %s18_s30 = sshll.u32 %s490_s29, 4  ;;  %s39_s6 = sshll.u32 %s491_s5, 4  ;;  %s19_s30 = int_to_ptr.vmem [resolvable:$true] %s18_s30  ;;  %s40_s6 = int_to_ptr.vmem [resolvable:$true] %s39_s6 }
  0x15   :  { %s415_s9 = scalar_lea.hbm %s601_s0, 128 }
  0x16   :  { %p416_p8 = scmp.ne.s32.totalorder %s601_s0, %s415_s9  ;;  %p419_p9 = scmp.lt.u32.totalorder %s415_s9, %s601_s0 }
  0x18   :  { %p421_p10 = pnand %p419_p9, %p416_p8 }
  0x1a   :  { %424 = shalt.err (!%p421_p10)
}
  0x1b   :  { %s425_s1 = scalar_lea.vmem %s19_s30, 128  ;;  %p430_p12 = scmp.lt.s32.totalorder %s19_s30, %s19_s30 }
  0x1c   :  { %p426_p11 = scmp.ne.s32.totalorder %s19_s30, %s425_s1  ;;  %p431_p13 = scmp.lt.s32.totalorder %s425_s1, %s425_s1 }
  0x1e   :  { %p432_p0 = por %p431_p13, %p430_p12 }
  0x20   :  { %p433_p1 = pnand %p432_p0, %p426_p11 }
  0x22   :  { %436 = shalt.err (!%p433_p1)
}
  0x23   :  { %21 = dma.hbm_to_vmem [thread:$0]  %s601_s0, 128, %s19_s30, [#allocation3]  }
  0x24   :  { %s437_s18 = scalar_lea.hbm %s603_s2, 1024 }
  0x25   :  { %p438_p2 = scmp.ne.s32.totalorder %s603_s2, %s437_s18  ;;  %p441_p3 = scmp.lt.u32.totalorder %s437_s18, %s603_s2 }
  0x27   :  { %p443_p4 = pnand %p441_p3, %p438_p2 }
  0x29   :  { %446 = shalt.err (!%p443_p4)
}
  0x2a   :  { %s447_s23 = scalar_lea.vmem %s40_s6, 1024  ;;  %p452_p6 = scmp.lt.s32.totalorder %s40_s6, %s40_s6 }
  0x2b   :  { %p448_p5 = scmp.ne.s32.totalorder %s40_s6, %s447_s23  ;;  %p453_p7 = scmp.lt.s32.totalorder %s447_s23, %s447_s23 }
  0x2d   :  { %p454_p8 = por %p453_p7, %p452_p6 }
  0x2f   :  { %p455_p9 = pnand %p454_p8, %p448_p5 }
  0x31   :  { %458 = shalt.err (!%p455_p9)
}
  0x32   :  { %45 = dma.hbm_to_vmem [thread:$0]  %s603_s2, 1024, %s40_s6, [#allocation6], %s488_s25, %s488_s25, %s489_s26  }
  0x33   :  { %481 = dma.done.wait [#allocation3], 128  }
  0x34   :  { %482 = vsyncadd [#allocation3], 4294967168 }
  0x35   :  { %483 = dma.done.wait [#allocation6], 1536  }
  0x36   :  { %484 = vsyncadd [#allocation6], 4294965760  ;;  %v492_v0 = vmov 0.0|0.0   ;;  %vm493_vm0 = vmmov 0   ;;  %v494_v1 = vmov 0.0   ;;  %v137_v2 = vlaneseq  ;;  %v59_v5 = vld [vmem:[#allocation5] sm:$0xff] }
  0x37   :  { %361 = vmatprep.subr.bf16.mxu0 %v492_v0  ;;  %339 = vmatprep.mubr.msk.f32.mxu0 %vm493_vm0, %v494_v1  ;;  %v60_v6 = vld [vmem:[#allocation5 + $0x8] sm:$0xff]  ;;  %v61_v7 = vld [vmem:[#allocation5 + $0x10] sm:$0xff]  ;;  %v62_v9 = vld [vmem:[#allocation5 + $0x18] sm:$0xff]  ;;  %s495_s26 = smov 64   ;;  %vm63_vm1 = vcmask 261120   ;;  %vm146_vm2 = vcmask 523264  }
  0x38   :  { %367 = vmatprep.subr.bf16.mxu1 %v492_v0  ;;  %358 = vmatprep.mubr.msk.f32.mxu1 %vm493_vm0, %v494_v1  ;;  %v564_v3 = vshrl.u32 %v137_v2, 7  ;;  %v362_v8 = vpack.c.bf16 %v60_v6, %v59_v5  ;;  %v570_v10 = vld [vmem:[%s604_s3] sm:$0xff]  ;;  %v365_v12 = vpack.c.bf16 %v62_v9, %v61_v7  ;;  %v180_v14 = vld [vmem:[#allocation7] sm:$0xff]  ;;  %v181_v15 = vld [vmem:[#allocation7 + $0x8] sm:$0xff]  ;;  %s496_s3 = smov [#allocation8]  }
  0x39   :  { %v57_v13 = vld [vmem:[#allocation2] sm:$0xff]  ;;  %v368_v16 = vpack.c.bf16 %v181_v15, %v180_v14  ;;  %v182_v17 = vld [vmem:[#allocation7 + $0x10] sm:$0xff]  ;;  %v184_v20 = vld [vmem:[#allocation7 + $0x20] sm:$0xff]  ;;  %s305_s27 = sshll.u32 %s496_s3, 4  ;;  %s306_s27 = int_to_ptr.vmem [resolvable:$true] %s305_s27 }
  0x3a   :  { %v139_v4 = vsub.s32 4, %v564_v3  ;;  %363 = vmatpush3.bf16.msra.mxu0 %v362_v8  ;;  %v183_v18 = vld [vmem:[#allocation7 + $0x18] sm:$0xff]  ;;  %v185_v21 = vld [vmem:[#allocation7 + $0x28] sm:$0xff]  ;;  %v186_v23 = vld [vmem:[#allocation7 + $0x30] sm:$0xff]  ;;  %v171_v49 = vsub.s32 0, %v564_v3  ;;  %v176_v50 = vsub.s32 1, %v564_v3  ;;  %p464_p11 = scmp.lt.s32.totalorder %s306_s27, %s306_s27 }
  0x3b   :  { %364 = vmatprep.subr.bf16.mxu0 %v492_v0  ;;  %369 = vmatpush3.bf16.msra.mxu1 %v368_v16  ;;  %v371_v19 = vpack.c.bf16 %v183_v18, %v182_v17  ;;  %v374_v22 = vpack.c.bf16 %v185_v21, %v184_v20  ;;  %v187_v24 = vld [vmem:[#allocation7 + $0x38] sm:$0xff]  ;;  %v284_v17 = vsub.s32 2, %v564_v3  ;;  %v289_v18 = vsub.s32 3, %v564_v3  ;;  %s459_s28 = scalar_lea.vmem %s306_s27, 128 }
  0x3c   :  { %v140_v11 = vrot.slane %v570_v10, %v139_v4  ;;  %370 = vmatprep.subr.bf16.mxu1 %v492_v0  ;;  %v377_v25 = vpack.c.bf16 %v187_v24, %v186_v23  ;;  %v177_v54 = vrot.slane %v570_v10, %v176_v50  ;;  %p460_p10 = scmp.ne.s32.totalorder %s306_s27, %s459_s28  ;;  %p465_p12 = scmp.lt.s32.totalorder %s459_s28, %s459_s28 }
  0x3e   :  { %142 = vrot.lane.b32.xlu0 %v140_v11, %s495_s26  ;;  %366 = vmatpush3.bf16.msra.mxu0 %v365_v12  ;;  %p466_p13 = por %p465_p12, %p464_p11 }
  0x3f   :  { %372 = vmatpush3.bf16.msra.mxu1 %v371_v19 }
  0x40   :  { %373 = vmatprep.subr.bf16.mxu1 %v492_v0  ;;  %p467_p0 = pnand %p466_p13, %p460_p10 }
  0x41   :  { %340 = vmatmul.mubr.msk.f32.vlgmr.msra.gmra.mrb[0].mxu0 %vm63_vm1, %v57_v13 }
  0x43   :  { %375 = vmatpush3.bf16.msra.mxu1 %v374_v22  ;;  %v290_v22 = vrot.slane %v570_v10, %v289_v18 }
  0x44   :  { %376 = vmatprep.subr.bf16.mxu1 %v492_v0 }
  0x47   :  { %378 = vmatpush3.bf16.msra.mxu1 %v377_v25 }
  0xb0   :  { %v143_v26 = vpop.permute.xlu0 %142 }
 0x114   :  { %v133_v27 = vpop.f32.mrb[0].mxu0 }
 0x115   :  { %v145_v28 = vadd.f32 %v143_v26, %v133_v27  ;;  %v147_v29 = vsel %vm146_vm2, %v133_v27, 0.0  ;;  %v341_v30 = vpop.f32.mrb[1].mxu0 }
 0x116   :  { %v148_v31 = vrot.slane %v147_v29, 4 }
 0x117   :  { %293 = vrot.lane.b32.xlu0 %v145_v28, %s495_s26 }
 0x118   :  { %v149_v32 = vadd.f32 %v148_v31, %v147_v29 }
 0x11a   :  { %v150_v33 = vrot.slane %v149_v32, 2 }
 0x11c   :  { %v151_v34 = vadd.f32 %v150_v33, %v149_v32 }
 0x11e   :  { %v152_v35 = vrot.slane %v151_v34, 1 }
 0x120   :  { %v153_v36 = vadd.f32 %v152_v35, %v151_v34 }
 0x122   :  { %v155_v37 = vmul.f32 0.125, %v153_v36 }
 0x124   :  { %v156_v38 = vsub.f32 %v133_v27, %v155_v37 }
 0x126   :  { %v157_v39 = vmul.f32 %v156_v38, %v156_v38 }
 0x128   :  { %v158_v40 = vsel %vm146_vm2, %v157_v39, 0.0 }
 0x129   :  { %v159_v41 = vrot.slane %v158_v40, 4 }
 0x12b   :  { %v160_v42 = vadd.f32 %v159_v41, %v158_v40 }
 0x12d   :  { %v161_v43 = vrot.slane %v160_v42, 2 }
 0x12f   :  { %v162_v44 = vadd.f32 %v161_v43, %v160_v42 }
 0x131   :  { %v163_v45 = vrot.slane %v162_v44, 1 }
 0x133   :  { %v164_v46 = vadd.f32 %v163_v45, %v162_v44 }
 0x135   :  { %v165_v47 = vmul.f32 0.125, %v164_v46 }
 0x137   :  { %v166_v48 = vadd.f32 1e-05, %v165_v47 }
 0x139   :  { %389 = vrsqrt.f32 %v166_v48 }
 0x143   :  { %v390_v51 = vpop.eup %389 }
 0x144   :  { %v168_v52 = vmul.f32 %v390_v51, %v570_v10 }
 0x146   :  { %v172_v53 = vrot.slane %v168_v52, %v171_v49 }
 0x148   :  { %v173_v55 = vmul.f32 %v172_v53, %v156_v38 }
 0x14a   :  { %v178_v56 = vadd.f32 %v177_v54, %v173_v55 }
 0x14c   :  { %v179_v57 = vmax.f32 %v178_v56, 0.0 }
 0x14e   :  { %359 = vmatmul.mubr.msk.f32.vlgmr.msra.gmra.mrb[0].mxu1 %vm146_vm2, %v179_v57 }
 0x189   :  { %v294_v25 = vpop.permute.xlu0 %293 }
 0x221   :  { %v257_v58 = vpop.f32.mrb[0].mxu1 }
 0x222   :  { %v261_v59 = vsel %vm146_vm2, %v257_v58, 0.0  ;;  %v360_v60 = vpop.f32.mrb[1].mxu1 }
 0x223   :  { %v262_v61 = vrot.slane %v261_v59, 4 }
 0x225   :  { %v263_v62 = vadd.f32 %v262_v61, %v261_v59 }
 0x227   :  { %v264_v63 = vrot.slane %v263_v62, 2 }
 0x229   :  { %v265_v0 = vadd.f32 %v264_v63, %v263_v62 }
 0x22b   :  { %v266_v1 = vrot.slane %v265_v0, 1 }
 0x22d   :  { %v267_v2 = vadd.f32 %v266_v1, %v265_v0 }
 0x22f   :  { %v268_v4 = vmul.f32 0.125, %v267_v2 }
 0x231   :  { %v269_v5 = vsub.f32 %v257_v58, %v268_v4 }
 0x233   :  { %v270_v6 = vmul.f32 %v269_v5, %v269_v5 }
 0x235   :  { %v271_v7 = vsel %vm146_vm2, %v270_v6, 0.0 }
 0x236   :  { %v272_v8 = vrot.slane %v271_v7, 4 }
 0x238   :  { %v273_v9 = vadd.f32 %v272_v8, %v271_v7 }
 0x23a   :  { %v274_v11 = vrot.slane %v273_v9, 2 }
 0x23c   :  { %v275_v12 = vadd.f32 %v274_v11, %v273_v9 }
 0x23e   :  { %v276_v13 = vrot.slane %v275_v12, 1 }
 0x240   :  { %v277_v14 = vadd.f32 %v276_v13, %v275_v12 }
 0x242   :  { %v278_v15 = vmul.f32 0.125, %v277_v14 }
 0x244   :  { %v279_v16 = vadd.f32 1e-05, %v278_v15 }
 0x246   :  { %391 = vrsqrt.f32 %v279_v16 }
 0x250   :  { %v392_v19 = vpop.eup %391 }
 0x251   :  { %v281_v20 = vmul.f32 %v392_v19, %v570_v10 }
 0x253   :  { %v285_v21 = vrot.slane %v281_v20, %v284_v17 }
 0x255   :  { %v286_v23 = vmul.f32 %v285_v21, %v269_v5 }
 0x257   :  { %v291_v24 = vadd.f32 %v290_v22, %v286_v23 }
 0x259   :  { %v296_v26 = vadd.f32 %v294_v25, %v291_v24 }
 0x25b   :  { %v297_v27 = vmax.f32 %v296_v26, 0.0 }
 0x25d   :  { %298 = vst.msk [vmem:[#allocation8] sm:$0xff] %vm146_vm2, %v297_v27 }
 0x25e   :  { %470 = shalt.err (!%p467_p0)
}
 0x25f   :  { %s471_s5 = scalar_lea.hbm %s605_s4, 128 }
 0x260   :  { %p472_p1 = scmp.ne.s32.totalorder %s605_s4, %s471_s5  ;;  %p475_p2 = scmp.lt.u32.totalorder %s471_s5, %s605_s4 }
 0x262   :  { %p477_p3 = pnand %p475_p2, %p472_p1 }
 0x264   :  { %480 = shalt.err (!%p477_p3)
}
 0x265   :  { %308 = dma.vmem_to_hbm [thread:$0]  %s306_s27, 128, %s605_s4, [#allocation4]  }
 0x266   :  { %485 = dma.done.wait [#allocation4], 128  }
 0x267   :  { %486 = vsyncadd [#allocation4], 4294967168 }
 0x268   :  { %312 = vsyncpa [#allocation3], 1 }
 0x269   :  { %313 = vsyncpa [#allocation6], 1 }
 0x26a   :  { %314 = vsyncpa [#allocation4], 1 }

</bundles_post_ra>
